<compile_context>
chip_gen: v7x
topology: tpu7x:2x2x1
jax: 0.10.0
libtpu: 0.0.40
codegen_flags: <defaults>
</compile_context>

<pallas_src>
import functools

import jax
import jax.numpy as jnp
from jax import lax
from jax.experimental import pallas as pl
from jax.experimental.pallas import tpu as pltpu


# Contract the last axis of lhs with the last axis of rhs (NT matmul).
_NT = (((1,), (1,)), ((), ()))


def _llama_mlp_kernel(x_ref, wg_ref, wu_ref, wd_ref, o_ref, acc_ref):
    """One (row-tile i, intermediate-tile j) grid step.

    x_ref   : [tm, H]  input rows
    wg_ref  : [ti, H]  gate_proj weight tile (PyTorch layout: out x in)
    wu_ref  : [ti, H]  up_proj   weight tile
    wd_ref  : [H, ti]  down_proj weight tile (PyTorch layout: out x in)
    o_ref   : [tm, H]  output rows (resident across the j axis)
    acc_ref : [tm, H]  f32 accumulator scratch
    """
    j = pl.program_id(1)

    @pl.when(j == 0)
    def _():
        acc_ref[...] = jnp.zeros_like(acc_ref)

    x = x_ref[...]
    # Gate / up projections for this slice of the intermediate dimension.
    # NT contraction on H: both operands are lane-dense on H, no transpose.
    g = lax.dot_general(x, wg_ref[...], dimension_numbers=_NT,
                        preferred_element_type=jnp.float32)
    u = lax.dot_general(x, wu_ref[...], dimension_numbers=_NT,
                        preferred_element_type=jnp.float32)
    # SiLU (ACT2FN["silu"]): g * sigmoid(g), gated with the up projection.
    h = (g * jax.nn.sigmoid(g)) * u
    # Partial down projection, accumulated over intermediate tiles:
    #   h[:, j*ti:(j+1)*ti] @ w_down[:, j*ti:(j+1)*ti].T  ->  [tm, H]
    acc_ref[...] += lax.dot_general(h.astype(x.dtype), wd_ref[...],
                                    dimension_numbers=_NT,
                                    preferred_element_type=jnp.float32)

    @pl.when(j == pl.num_programs(1) - 1)
    def _():
        o_ref[...] = acc_ref[...].astype(o_ref.dtype)


def _pick_row_tile(M, target=256):
    """MXU-scale row tile that divides M (multiple of 8 unless tm == M)."""
    tm = min(target, M)
    while tm > 8 and M % tm != 0:
        tm -= 8
    if M % tm != 0:
        tm = M
    # v7x has 2 TensorCores sharing the "parallel" grid axis: keep at least
    # two row steps whenever tm can be halved and stay a multiple of 8.
    if M // tm < 2 and tm % 16 == 0:
        tm //= 2
    return tm


def _pick_inter_tile(I, target=512):
    """Intermediate tile: multiple of 128 (lane-dense down tile) dividing I."""
    ti = min(target, I)
    if ti < I:
        ti = max(128, (ti // 128) * 128)
        while ti > 128 and I % ti != 0:
            ti -= 128
    if I % ti != 0:
        ti = I  # TODO(synk): pad I for ragged shapes not divisible by 128.
    return ti


@functools.partial(jax.jit, static_argnames=("tm", "ti"))
def llama_mlp(x, w_gate, w_up, w_down, *, tm=None, ti=None):
    """x: [B, S, H]; w_gate/w_up: [I, H]; w_down: [H, I] (PyTorch layouts)."""
    B, S, H = x.shape
    I, Hg = w_gate.shape
    assert Hg == H and w_up.shape == (I, H) and w_down.shape == (H, I)
    M = B * S
    x2d = x.reshape(M, H)

    if tm is None:
        tm = _pick_row_tile(M)
    if ti is None:
        ti = _pick_inter_tile(I)
    assert M % tm == 0 and I % ti == 0

    x_b = jnp.dtype(x.dtype).itemsize
    w_b = jnp.dtype(w_gate.dtype).itemsize

    def _vmem_need(tm_, ti_):
        return (2 * tm_ * H * x_b          # x tile (double-buffered)
                + 2 * 2 * ti_ * H * w_b    # gate + up weight tiles
                + 2 * H * ti_ * w_b        # down weight tile
                + 2 * tm_ * H * x_b        # output tile
                + tm_ * H * 4              # f32 accumulator scratch
                + 3 * tm_ * ti_ * 4)       # g / u / h f32 temporaries

    # Shrink the reduction tile first (never the lane-dense output width)
    # until tiles fit a v7x-safe scoped-VMEM budget.
    budget = 48 << 20
    while _vmem_need(tm, ti) > budget and ti % 256 == 0:
        ti //= 2
    while _vmem_need(tm, ti) > budget and tm % 16 == 0 and M % (tm // 2) == 0:
        tm //= 2
    vmem_need = _vmem_need(tm, ti)
    vmem_limit = min(max(int(vmem_need * 1.25) + (2 << 20), 32 << 20), 64 << 20)

    cost = pl.CostEstimate(
        flops=6 * M * I * H,               # 3 matmuls of 2*M*I*H each
        transcendentals=M * I,             # sigmoid
        bytes_accessed=2 * M * H * x_b + 3 * I * H * w_b)

    out2d = pl.pallas_call(
        _llama_mlp_kernel,
        out_shape=jax.ShapeDtypeStruct((M, H), x.dtype),
        grid_spec=pltpu.PrefetchScalarGridSpec(
            num_scalar_prefetch=0,
            grid=(M // tm, I // ti),        # reduction (intermediate) axis last
            in_specs=[
                pl.BlockSpec((tm, H), lambda i, j: (i, 0)),   # x rows
                pl.BlockSpec((ti, H), lambda i, j: (j, 0)),   # gate_proj W
                pl.BlockSpec((ti, H), lambda i, j: (j, 0)),   # up_proj   W
                pl.BlockSpec((H, ti), lambda i, j: (0, j)),   # down_proj W ([H, I])
            ],
            out_specs=pl.BlockSpec((tm, H), lambda i, j: (i, 0)),
            scratch_shapes=[pltpu.VMEM((tm, H), jnp.float32)],
        ),
        compiler_params=pltpu.CompilerParams(
            dimension_semantics=("parallel", "arbitrary"),
            vmem_limit_bytes=vmem_limit),
        cost_estimate=cost,
    )(x2d, w_gate, w_up, w_down)

    return out2d.reshape(B, S, H)


def _reference(x, w_gate, w_up, w_down):
    g = x @ w_gate.T
    u = x @ w_up.T
    h = (g * jax.nn.sigmoid(g)) * u   # SiLU
    return h @ w_down.T


if __name__ == "__main__":
    batch, seq, hidden, intermediate = 2, 8, 32, 64

    key = jax.random.PRNGKey(0)
    kx, kg, ku, kd = jax.random.split(key, 4)

    x = jax.random.normal(kx, (batch, seq, hidden), dtype=jnp.float32)
    # Deterministic "init" of the nn.Linear weights (PyTorch layout: out x in).
    scale = 0.05
    w_gate = scale * jax.random.normal(kg, (intermediate, hidden), dtype=jnp.float32)
    w_up = scale * jax.random.normal(ku, (intermediate, hidden), dtype=jnp.float32)
    w_down = scale * jax.random.normal(kd, (hidden, intermediate), dtype=jnp.float32)

    out = llama_mlp(x, w_gate, w_up, w_down)
    out = jax.block_until_ready(out)

    ref = _reference(x, w_gate, w_up, w_down)
    assert out.shape == (batch, seq, hidden)
    assert jnp.allclose(out, ref, atol=1e-5, rtol=1e-5), "mismatch vs reference"

    print("KERNEL_OK")
</pallas_src>

<mosaic_0001>
module attributes {stable_mosaic.version = 11 : i64} {
  func.func @_llama_mlp_kernel(%arg0: i32, %arg1: i32, %arg2: memref<8x32xf32, #tpu.memory_space<vmem>>, %arg3: memref<64x32xf32, #tpu.memory_space<vmem>>, %arg4: memref<64x32xf32, #tpu.memory_space<vmem>>, %arg5: memref<32x64xf32, #tpu.memory_space<vmem>>, %arg6: memref<8x32xf32, #tpu.memory_space<vmem>>, %arg7: memref<8x32xf32, #tpu.memory_space<vmem>>) attributes {dimension_semantics = [#tpu.dimension_semantics<parallel>, #tpu.dimension_semantics<arbitrary>], iteration_bounds = array<i64: 2, 1>, scalar_prefetch = 0 : i64, scratch_operands = 1 : i64, tpu.core_type = #tpu.core_type<tc>, window_params = [{transform_indices = @transform_0, window_bounds = array<i64: 8, 32>}, {transform_indices = @transform_1, window_bounds = array<i64: 64, 32>}, {transform_indices = @transform_2, window_bounds = array<i64: 64, 32>}, {transform_indices = @transform_3, window_bounds = array<i64: 32, 64>}, {transform_indices = @transform_4, window_bounds = array<i64: 8, 32>}]} {
    %c0_i32 = arith.constant 0 : i32
    %0 = arith.cmpi eq, %arg1, %c0_i32 : i32
    %1 = arith.extui %0 : i1 to i32
    %c0_i32_0 = arith.constant 0 : i32
    %2 = arith.cmpi ne, %1, %c0_i32_0 : i32
    scf.if %2 {
      %cst_17 = arith.constant 0.000000e+00 : f32
      %23 = vector.broadcast %cst_17 : f32 to vector<8x32xf32>
      %c0_18 = arith.constant 0 : index
      %c0_19 = arith.constant 0 : index
      %24 = vector.load %arg7[%c0_18, %c0_19] : memref<8x32xf32, #tpu.memory_space<vmem>>, vector<8x32xf32>
      tpu.vector_store %arg7[%c0_18, %c0_19], %23 {strides = array<i32>} : memref<8x32xf32, #tpu.memory_space<vmem>>, vector<8x32xf32>,
    } else {
    }
    %c0 = arith.constant 0 : index
    %c0_1 = arith.constant 0 : index
    %3 = vector.load %arg2[%c0, %c0_1] : memref<8x32xf32, #tpu.memory_space<vmem>>, vector<8x32xf32>
    %c0_2 = arith.constant 0 : index
    %c0_3 = arith.constant 0 : index
    %4 = vector.load %arg3[%c0_2, %c0_3] : memref<64x32xf32, #tpu.memory_space<vmem>>, vector<64x32xf32>
    %cst = arith.constant dense<0.000000e+00> : vector<8x64xf32>
    %5 = tpu.matmul %3, %4, %cst {dimension_numbers = #tpu.dot_dimension_numbers<[1], [1], [0], [0], [0, 0, 1, 0], [], []>} : vector<8x32xf32>, vector<64x32xf32>, vector<8x64xf32> -> vector<8x64xf32>
    %c0_4 = arith.constant 0 : index
    %c0_5 = arith.constant 0 : index
    %6 = vector.load %arg4[%c0_4, %c0_5] : memref<64x32xf32, #tpu.memory_space<vmem>>, vector<64x32xf32>
    %cst_6 = arith.constant dense<0.000000e+00> : vector<8x64xf32>
    %7 = tpu.matmul %3, %6, %cst_6 {dimension_numbers = #tpu.dot_dimension_numbers<[1], [1], [0], [0], [0, 0, 1, 0], [], []>} : vector<8x32xf32>, vector<64x32xf32>, vector<8x64xf32> -> vector<8x64xf32>
    %8 = arith.negf %5 : vector<8x64xf32>
    %9 = math.exp %8 : vector<8x64xf32>
    %cst_7 = arith.constant 1.000000e+00 : f32
    %10 = vector.broadcast %cst_7 : f32 to vector<8x64xf32>
    %11 = arith.addf %10, %9 : vector<8x64xf32>
    %12 = arith.divf %10, %11 : vector<8x64xf32>
    %13 = arith.mulf %5, %12 : vector<8x64xf32>
    %14 = arith.mulf %13, %7 : vector<8x64xf32>
    %c0_8 = arith.constant 0 : index
    %c0_9 = arith.constant 0 : index
    %15 = vector.load %arg7[%c0_8, %c0_9] : memref<8x32xf32, #tpu.memory_space<vmem>>, vector<8x32xf32>
    %c0_10 = arith.constant 0 : index
    %c0_11 = arith.constant 0 : index
    %16 = vector.load %arg5[%c0_10, %c0_11] : memref<32x64xf32, #tpu.memory_space<vmem>>, vector<32x64xf32>
    %cst_12 = arith.constant dense<0.000000e+00> : vector<8x32xf32>
    %17 = tpu.matmul %14, %16, %cst_12 {dimension_numbers = #tpu.dot_dimension_numbers<[1], [1], [0], [0], [0, 0, 1, 0], [], []>} : vector<8x64xf32>, vector<32x64xf32>, vector<8x32xf32> -> vector<8x32xf32>
    %18 = arith.addf %15, %17 : vector<8x32xf32>
    %c0_13 = arith.constant 0 : index
    %c0_14 = arith.constant 0 : index
    %19 = vector.load %arg7[%c0_13, %c0_14] : memref<8x32xf32, #tpu.memory_space<vmem>>, vector<8x32xf32>
    tpu.vector_store %arg7[%c0_13, %c0_14], %18 {strides = array<i32>} : memref<8x32xf32, #tpu.memory_space<vmem>>, vector<8x32xf32>,
    %c0_i32_15 = arith.constant 0 : i32
    %20 = arith.cmpi eq, %arg1, %c0_i32_15 : i32
    %21 = arith.extui %20 : i1 to i32
    %c0_i32_16 = arith.constant 0 : i32
    %22 = arith.cmpi ne, %21, %c0_i32_16 : i32
    scf.if %22 {
      %c0_17 = arith.constant 0 : index
      %c0_18 = arith.constant 0 : index
      %23 = vector.load %arg7[%c0_17, %c0_18] : memref<8x32xf32, #tpu.memory_space<vmem>>, vector<8x32xf32>
      %c0_19 = arith.constant 0 : index
      %c0_20 = arith.constant 0 : index
      %24 = vector.load %arg6[%c0_19, %c0_20] : memref<8x32xf32, #tpu.memory_space<vmem>>, vector<8x32xf32>
      tpu.vector_store %arg6[%c0_19, %c0_20], %23 {strides = array<i32>} : memref<8x32xf32, #tpu.memory_space<vmem>>, vector<8x32xf32>,
    } else {
    }
    return
  }
  func.func @transform_0(%arg0: i32, %arg1: i32) -> (i32, i32) {
    %c0_i32 = arith.constant 0 : i32
    %c0_i32_0 = arith.constant 0 : i32
    return %arg0, %c0_i32 : i32, i32
  }
  func.func @transform_1(%arg0: i32, %arg1: i32) -> (i32, i32) {
    %c0_i32 = arith.constant 0 : i32
    %c0_i32_0 = arith.constant 0 : i32
    return %arg1, %c0_i32 : i32, i32
  }
  func.func @transform_2(%arg0: i32, %arg1: i32) -> (i32, i32) {
    %c0_i32 = arith.constant 0 : i32
    %c0_i32_0 = arith.constant 0 : i32
    return %arg1, %c0_i32 : i32, i32
  }
  func.func @transform_3(%arg0: i32, %arg1: i32) -> (i32, i32) {
    %c0_i32 = arith.constant 0 : i32
    %c0_i32_0 = arith.constant 0 : i32
    return %c0_i32, %arg1 : i32, i32
  }
  func.func @transform_4(%arg0: i32, %arg1: i32) -> (i32, i32) {
    %c0_i32 = arith.constant 0 : i32
    %c0_i32_0 = arith.constant 0 : i32
    return %arg0, %c0_i32 : i32, i32
  }
}

</mosaic_0001>

<bundles_post_ra>
// kernel: llama_mlp.1
= control target key start
LH: loop header
LB: loop body
LE: loop exit
PB: predicated region body
PF: predicated region fallthrough
CT: control target
= control target key end

     0   :  { %9 = vsyncpa [#allocation4], 0  ;;  %s1239_s0 = inlined_call_operand.vmem [shape: f32[16,32], index: 0, kind: input, shape index: {}]   ;;  %s1240_s1 = inlined_call_operand.vmem [shape: f32[64,32], index: 1, kind: input, shape index: {}]   ;;  %s1241_s2 = inlined_call_operand.vmem [shape: f32[64,32], index: 2, kind: input, shape index: {}]   ;;  %s1242_s3 = inlined_call_operand.vmem [shape: f32[32,64], index: 3, kind: input, shape index: {}]   ;;  %s1243_s4 = inlined_call_operand.hbm [shape: f32[16,32], index: 4, kind: output, shape index: {}]  }
   0x1   :  { %11 = vsyncpa [#allocation4 + $0x1], 0  ;;  %s1034_s15 = smov 0   ;;  %s1036_s16 = smov 0  }
   0x2   :  { %s1038_s17 = smov 0   ;;  %s1040_s18 = smov 0  }
   0x3   :  { %s1042_s19 = smov 0   ;;  %s1044_s20 = smov 0  }
   0x4 LB: > { %s713_s21 = sadd.s32 4294967295, %s1003_s20   ;;  %s714_s22 = sadd.s32 4294967294, %s1003_s20   ;;  %s1003_s20 = sphi %s1044_s20, %s17_s20   ;;  %s999_s19 = sphi %s1042_s19, %s1252_s19   ;;  %s995_s18 = sphi %s1040_s18, %s1251_s18   ;;  %s991_s17 = sphi %s1038_s17, %s1250_s17   ;;  %s987_s16 = sphi %s1036_s16, %s1249_s16   ;;  %s983_s15 = sphi %s1034_s15, %s1248_s15  }
   0x5   : > { %s29_s23 = sadd.s32 1, %s999_s19  ;;  %s140_s24 = sadd.s32 1, %s991_s17 }
   0x6   : > { %p31_p0 = scmp.ge.s32.totalorder %s29_s23, 2  ;;  %p150_p1 = scmp.ne.s32.totalorder %s991_s17, %s987_s16 }
   0x7   : > { %p151_p2 = scmp.eq.s32.totalorder %s713_s21, 1  ;;  %p156_p3 = scmp.ne.s32.totalorder %s987_s16, %s983_s15 }
   0x8   : > { %s1254_s23 = smov (%p31_p0, %s29_s23), 0  ;;  %p157_p5 = scmp.eq.s32.totalorder %s714_s22, 1 }
   0x9   : > { %p1074_p4 = por %p151_p2, %p150_p1  ;;  %s137_s26 = ssub.s32 %s999_s19, %s1254_s23 }
   0xa   : > { %p720_p6 = scmp.ge.s32.totalorder %s1003_s20, 1  ;;  %p138_p7 = scmp.eq.s32.totalorder %s137_s26, 0 }
   0xb   : > { %p1081_p8 = por %p157_p5, %p156_p3  ;;  %p207_p9 = scmp.lt.s32.totalorder %s1003_s20, 3 }
   0xc   : > { %s1087_s28 = scalar_select %p138_p7, %s991_s17, %s140_s24  }
   0xd   : > { %p208_p10 = pnand %p720_p6, %p207_p9 }
   0xe   : > { %vm270_vm0 = vcmask (!%p208_p10), 261120   ;;  %v273_v0 = vld [vmem:[%s1240_s1] sm:$0xff] (!%p208_p10)  ;;  %v274_v1 = vld [vmem:[%s1240_s1 + $0x8] sm:$0xff] (!%p208_p10)  ;;  %v1005_v2 = vmov (!%p208_p10), 0.0|0.0   ;;  %v1006_v5 = vmov (!%p208_p10), 0.0   ;;  %vm1007_vm2 = vmmov (!%p208_p10), 0  }
   0xf   : > { %211 = sbr.rel (%p208_p10) target bundleno = 526 (0x20e), region = 36  ;;  %823 = vmatprep.subr.bf16.mxu0 (!%p208_p10), %v1005_v2  ;;  %v824_v3 = vpack.c.bf16 (!%p208_p10), %v274_v1, %v273_v0  ;;  %vm1097_vm1 = vmpackc.low (!%p208_p10), %vm270_vm0, %vm270_vm0  ;;  %839 = vmatprep.subr.bf16.mxu1 (!%p208_p10), %v1005_v2  ;;  %271 = vst.msk [vmem:[#allocation2] sm:$0xff] (!%p208_p10), %vm270_vm0, %v1006_v5  ;;  %v379_v6 = vld [vmem:[%s1241_s2] sm:$0xff] (!%p208_p10)  ;;  %v380_v7 = vld [vmem:[%s1241_s2 + $0x8] sm:$0xff] (!%p208_p10)  ;;  %p246_p11 = scmp.lt.s32.totalorder (!%p208_p10), %s995_s18, 1  ;;  %vm494_vm3 = vcmask (!%p208_p10), 523264  }
  0x10   : > { %790 = vmatprep.mubr.msk.f32.mxu0 (!%p208_p10), %vm1007_vm2, %v1006_v5  ;;  %809 = vmatprep.mubr.msk.f32.mxu1 (!%p208_p10), %vm1007_vm2, %v1006_v5  ;;  %v275_v8 = vld [vmem:[%s1240_s1 + $0x10] sm:$0xff] (!%p208_p10)  ;;  %v276_v9 = vld [vmem:[%s1240_s1 + $0x18] sm:$0xff] (!%p208_p10)  ;;  %v840_v10 = vpack.c.bf16 (!%p208_p10), %v380_v7, %v379_v6  ;;  %v277_v15 = vld [vmem:[%s1240_s1 + $0x20] sm:$0xff] (!%p208_p10)  ;;  %s243_s22 = sand.u32 (!%p208_p10), 1, %s987_s16   ;;  %s748_s26 = sshll.u32 (!%p208_p10), %s995_s18, 7 }
  0x11   : > { %826 = vmatpush3.bf16.xpose.msk.msra.mxu0 (!%p208_p10), %vm1097_vm1, %v824_v3  ;;  %v828_v11 = vpack.c.bf16 (!%p208_p10), %v276_v9, %v275_v8  ;;  %v381_v12 = vld [vmem:[%s1241_s2 + $0x10] sm:$0xff] (!%p208_p10)  ;;  %v382_v13 = vld [vmem:[%s1241_s2 + $0x18] sm:$0xff] (!%p208_p10)  ;;  %v278_v16 = vld [vmem:[%s1240_s1 + $0x28] sm:$0xff] (!%p208_p10)  ;;  %s721_s24 = sshll.u32 (!%p208_p10), %s243_s22, 3  ;;  %s588_s8 = scalar_lea.sflag (!%p208_p10), [#allocation4], %s243_s22 }
  0x12   : > { %827 = vmatprep.subr.bf16.mxu0 (!%p208_p10), %v1005_v2  ;;  %842 = vmatpush3.bf16.xpose.msk.msra.mxu1 (!%p208_p10), %vm1097_vm1, %v840_v10  ;;  %v844_v14 = vpack.c.bf16 (!%p208_p10), %v382_v13, %v381_v12  ;;  %v832_v17 = vpack.c.bf16 (!%p208_p10), %v278_v16, %v277_v15  ;;  %v383_v18 = vld [vmem:[%s1241_s2 + $0x20] sm:$0xff] (!%p208_p10)  ;;  %v384_v19 = vld [vmem:[%s1241_s2 + $0x28] sm:$0xff] (!%p208_p10)  ;;  %v279_v21 = vld [vmem:[%s1240_s1 + $0x30] sm:$0xff] (!%p208_p10)  ;;  %s245_s29 = scalar_lea.vmem (!%p208_p10), [#allocation3], %s721_s24 }
  0x13   : > { %843 = vmatprep.subr.bf16.mxu1 (!%p208_p10), %v1005_v2  ;;  %v848_v20 = vpack.c.bf16 (!%p208_p10), %v384_v19, %v383_v18  ;;  %v280_v22 = vld [vmem:[%s1240_s1 + $0x38] sm:$0xff] (!%p208_p10)  ;;  %v385_v24 = vld [vmem:[%s1241_s2 + $0x30] sm:$0xff] (!%p208_p10)  ;;  %v490_v28 = vld [vmem:[%s1242_s3] sm:$0xff] (!%p208_p10) }
  0x14   : > { %v836_v23 = vpack.c.bf16 (!%p208_p10), %v280_v22, %v279_v21  ;;  %v386_v25 = vld [vmem:[%s1241_s2 + $0x38] sm:$0xff] (!%p208_p10)  ;;  %v491_v29 = vld [vmem:[%s1242_s3 + $0x8] sm:$0xff] (!%p208_p10)  ;;  %vm857_vm4 = vmpackc.low (!%p208_p10), %vm494_vm3, %vm494_vm3 }
  0x15   : > { %v852_v26 = vpack.c.bf16 (!%p208_p10), %v386_v25, %v385_v24  ;;  %v856_v30 = vpack.c.bf16 (!%p208_p10), %v491_v29, %v490_v28  ;;  %v492_v31 = vld [vmem:[%s1242_s3 + $0x10] sm:$0xff] (!%p208_p10)  ;;  %v493_v32 = vld [vmem:[%s1242_s3 + $0x18] sm:$0xff] (!%p208_p10) }
  0x16   : > { %s247_s21 = scalar_select %p246_p11, %s995_s18, 1  ;;  %v860_v33 = vpack.c.bf16 %v493_v32, %v492_v31  ;;  %v489_v44 = vld [vmem:[#allocation2] sm:$0xff] }
  0x17   : > { %s1008_s18 = smov [#allocation3]  }
  0x18   : > { %s722_s30 = sshll.u32 %s247_s21, 3  ;;  %s929_s10 = sshll.u32 %s1008_s18, 4  ;;  %s930_s10 = int_to_ptr.vmem [resolvable:$false] %s929_s10 }
  0x19   : > { %830 = vmatpush3.bf16.xpose.msk.msra.mxu0 %vm1097_vm1, %v828_v11  ;;  %s249_s7 = scalar_lea.vmem %s1239_s0, %s722_s30  ;;  %s601_s30 = sshll.u32 %s245_s29, 4  ;;  %s1193_s30 = int_to_ptr.vmem [resolvable:$true] %s601_s30 }
  0x1a   : > { %831 = vmatprep.subr.bf16.mxu0 %v1005_v2  ;;  %846 = vmatpush3.bf16.xpose.msk.msra.mxu1 %vm1097_vm1, %v844_v14  ;;  %v272_v27 = vld [vmem:[%s249_s7] sm:$0xff]  ;;  %s1191_s7 = scalar_lea.hbm %s1243_s4, %s748_s26  ;;  %s925_s9 = scalar_lea.vmem %s1193_s30, 128 }
  0x1b   : > { %847 = vmatprep.subr.bf16.mxu1 %v1005_v2  ;;  %p926_p12 = scmp.ne.s32.totalorder %s1193_s30, %s925_s9  ;;  %s931_s11 = scalar_lea.vmem %s930_s10, 256 }
  0x1c   : > { %p932_p1 = scmp.lt.s32.totalorder %s1193_s30, %s930_s10  ;;  %p933_p2 = scmp.lt.s32.totalorder %s931_s11, %s925_s9 }
  0x1d   : > { %p927_p13 = pnand %p926_p12, %p1074_p4 }
  0x1e   : > { %p934_p3 = por %p933_p2, %p932_p1 }
  0x1f   : > { %p928_p0 = pneg %p927_p13 }
  0x21   : > { %834 = vmatpush3.bf16.xpose.msk.msra.mxu0 %vm1097_vm1, %v832_v17  ;;  %p935_p5 = pnand %p934_p3, %p928_p0 }
  0x22   : > { %835 = vmatprep.subr.bf16.mxu0 %v1005_v2  ;;  %850 = vmatpush3.bf16.xpose.msk.msra.mxu1 %vm1097_vm1, %v848_v20 }
  0x23   : > { %851 = vmatprep.subr.bf16.mxu1 %v1005_v2 }
  0x29   : > { %838 = vmatpush3.bf16.xpose.msk.msra.mxu0 %vm1097_vm1, %v836_v23 }
  0x2a   : > { %855 = vmatprep.subr.bf16.mxu0 %v1005_v2  ;;  %854 = vmatpush3.bf16.xpose.msk.msra.mxu1 %vm1097_vm1, %v852_v26 }
  0x30   : > { %791 = vmatmul.mubr.msk.f32.vlgmr.msra.gmra.mrb[0].mxu0 %vm270_vm0, %v272_v27 }
  0x31   : > { %820 = vmatprep.mubr.msk.f32.mxu0 %vm1007_vm2, %v1006_v5  ;;  %810 = vmatmul.mubr.msk.f32.vlgmr.msra.gmra.mrb[0].mxu1 %vm270_vm0, %v272_v27 }
  0x32   : > { %858 = vmatpush3.bf16.xpose.msk.msra.mxu0 %vm857_vm4, %v856_v30 }
  0x33   : > { %859 = vmatprep.subr.bf16.mxu0 %v1005_v2 }
  0x3a   : > { %862 = vmatpush3.bf16.xpose.msk.msra.mxu0 %vm857_vm4, %v860_v33 }
 0x103   : > { %v375_v34 = vpop.f32.mrb[0].mxu0 }
 0x104   : > { %v741_v35 = vmul.f32 -1.442695, %v375_v34  ;;  %v792_v36 = vpop.f32.mrb[1].mxu0  ;;  %v477_v37 = vpop.f32.mrb[0].mxu1 }
 0x105   : > { %v811_v38 = vpop.f32.mrb[1].mxu1 }
 0x106   : > { %921 = vpow2.f32 %v741_v35 }
 0x110   : > { %v922_v39 = vpop.eup %921 }
 0x111   : > { %v484_v40 = vadd.f32 1.0, %v922_v39 }
 0x113   : > { %923 = vrcp.f32 %v484_v40 }
 0x11d   : > { %v924_v41 = vpop.eup %923 }
 0x11e   : > { %v487_v42 = vmul.f32 %v924_v41, %v375_v34 }
 0x120   : > { %v488_v43 = vmul.f32 %v487_v42, %v477_v37 }
 0x122   : > { %821 = vmatmul.mubr.msk.f32.vlgmr.msra.gmra.mrb[2].mxu0 %vm494_vm3, %v488_v43 }
 0x1f5   : > { %v576_v45 = vpop.f32.mrb[2].mxu0 }
 0x1f6   : > { %v580_v46 = vadd.f32 %v576_v45, %v489_v44  ;;  %v822_v47 = vpop.f32.mrb[3].mxu0 }
 0x1f8   : > { %581 = vst.msk [vmem:[#allocation2] sm:$0xff] %vm270_vm0, %v580_v46 }
 0x1ff   : > { %v585_v48 = vld [vmem:[#allocation2] sm:$0xff] }
 0x200   : > { %586 = vst.msk [vmem:[%s245_s29] sm:$0xff] %vm270_vm0, %v585_v48 }
 0x201   : > { %938 = shalt.err (!%p935_p5)
}
 0x202   : > { %s939_s12 = scalar_lea.hbm %s1191_s7, 128  ;;  %s943_s21 = scalar_lea.hbm %s1243_s4, 256 }
 0x203   : > { %p940_p6 = scmp.ne.s32.totalorder %s1191_s7, %s939_s12  ;;  %p944_p10 = scmp.lt.u32.totalorder %s1191_s7, %s1243_s4 }
 0x204   : > { %p945_p11 = scmp.lt.u32.totalorder %s943_s21, %s939_s12  ;;  %p947_p13 = scmp.lt.u32.totalorder %s939_s12, %s1191_s7 }
 0x205   : > { %p941_p7 = pnand %p940_p6, %p1074_p4 }
 0x206   : > { %p946_p12 = por %p945_p11, %p944_p10 }
 0x207   : > { %p942_p9 = pneg %p941_p7 }
 0x208   : > { %p948_p0 = por %p947_p13, %p946_p12 }
 0x20a   : > { %p949_p1 = pnand %p948_p0, %p942_p9 }
 0x20c   : > { %952 = shalt.err (!%p949_p1)
}
 0x20d   : > { %863 = dma.vmem_to_hbm [thread:$0]  (%p1074_p4), %s1193_s30, 128, %s1191_s7, %s588_s8  }
 0x20e PF: > { %p869_p2 = scmp.ge.s32.totalorder %s1003_s20, 2  ;;  %s613_s26 = sand.u32 1, %s983_s15  }
 0x20f   : > { %s614_s29 = scalar_lea.sflag [#allocation4], %s613_s26 }
 0x210   : > { %p866_p3 = pnand %p869_p2, %p1081_p8 }
 0x212   : > { %978 = dma.done.wait (!%p866_p3), %s614_s29, 128  }
 0x213   : > { %980 = vsyncadd (!%p866_p3), %s614_s29, 4294967168  ;;  %s17_s20 = sadd.s32 1, %s1003_s20   ;;  %s1248_s15 = smov %s987_s16 }
 0x214   : > { %p14_p5 = scmp.ge.s32.totalorder %s17_s20, 4   ;;  %s1249_s16 = smov %s991_s17 }
 0x215   : > { %s1250_s17 = smov %s1087_s28  ;;  %s1251_s18 = smov %s999_s19 }
 0x216   : > { %s1252_s19 = smov %s1254_s23  ;;  %16 = sbr.rel (!%p14_p5) target bundleno = 4 (0x4), region = 88 }
 0x21d   :  { %619 = vsyncpa [#allocation4], 1 }
 0x21e   :  { %621 = vsyncpa [#allocation4 + $0x1], 1 }

</bundles_post_ra>
